<compile_context>
chip_gen: v7x
topology: tpu7x:2x2x1
jax: 0.10.0
libtpu: 0.0.40
codegen_flags: <defaults>
</compile_context>

<pallas_src>
import jax
import jax.numpy as jnp
from jax.experimental import pallas as pl
from jax.experimental.pallas import tpu as pltpu


def coord_attention_kernel(
    x_ref,                       # (BC, L)   BC = Bn*C, L = H*W  (lane-dense)
    w1_ref, w2_ref,              # (BC, BC)  block-diag, BN scale folded
    w3h_ref, w3w_ref,            # (BC, BC)  block-diag, BN scale folded
    ah_ref, aw_ref,              # (L, H), (L, W)  mean-pooling matrices
    eh_ref, ew_ref,              # (H, L), (W, L)  broadcast-expansion matrices
    b1_ref, b2_ref, b3_ref,      # (BC, 1)   BN shifts, tiled over Bn
    o_ref,                       # (BC, L)
):
    xb = x_ref[...]                                                    # (BC, L)
    ah = ah_ref[...]
    aw = aw_ref[...]

    # ---- directional average pooling as constant matmuls (1/W, 1/H folded) ----
    hd = jnp.dot(xb, ah, preferred_element_type=jnp.float32)          # (BC, H)
    wd = jnp.dot(xb, aw, preferred_element_type=jnp.float32)          # (BC, W)

    # ---- 1x1 convs (block-diag, BN scale folded) + BN shift + sigmoid ----
    a_h = jax.nn.sigmoid(
        jnp.dot(w1_ref[...], hd, preferred_element_type=jnp.float32) + b1_ref[...])
    a_w = jax.nn.sigmoid(
        jnp.dot(w2_ref[...], wd, preferred_element_type=jnp.float32) + b2_ref[...])

    # ---- broadcast the gates back onto the lane-dense (BC, L) layout ----
    g_h = jnp.dot(a_h, eh_ref[...], preferred_element_type=jnp.float32)   # (BC, L)
    g_w = jnp.dot(a_w, ew_ref[...], preferred_element_type=jnp.float32)   # (BC, L)

    # ---- pooled descriptors of the gated features (x_att never materialized) ----
    d_h = jnp.dot(xb * g_w, ah, preferred_element_type=jnp.float32) * a_h  # (BC, H)
    d_w = jnp.dot(xb * g_h, aw, preferred_element_type=jnp.float32) * a_w  # (BC, W)

    # ---- conv3 (concat folded into two block-diag matmuls) + BN3 + sigmoid ----
    z = (jnp.dot(w3h_ref[...], d_h, preferred_element_type=jnp.float32)
         + jnp.dot(w3w_ref[...], d_w, preferred_element_type=jnp.float32))  # (BC, H)
    g = jax.nn.sigmoid(z + b3_ref[...])                                     # (BC, H)

    # ---- final gate, broadcast over W, applied on the lane-dense view ----
    o_ref[...] = jnp.dot(g, eh_ref[...], preferred_element_type=jnp.float32) * xb


def _choose_block_n(N, C, L, itemsize):
    """How many batch elements each grid step processes.

    Targets ~2 MiB of x per step (amortizes per-step pipeline overhead),
    caps the replicated block-diagonal conv weights at ~4 MiB each, and keeps
    the grid length >= 2 so both v7x TensorCores get work.
    """
    target_bytes = 2 * 1024 * 1024
    cap = max(1, target_bytes // max(1, C * L * itemsize))
    cap = min(cap, max(1, 1024 // max(1, C)))   # (Bn*C)^2 * 4B weight <= 4 MiB
    if N >= 2:
        cap = min(cap, N // 2)
    cap = max(1, min(cap, N))

    best = None
    for d in range(1, cap + 1):                 # divisor of N with 8-aligned rows
        if N % d == 0 and (d * C) % 8 == 0:
            best = d
    if best is None:
        best = 1
        for d in range(1, cap + 1):
            if N % d == 0:
                best = d
        if (best * C) % 8 != 0 and best != N:
            best = N                            # full block rows are layout-exempt
    return best


def coord_attention(x, params):
    N, C, H, W = x.shape
    assert H == W, "CoordAttention conv3-fold / final gate requires H == W"
    w1, w2, w3h, w3w, s1, b1, s2, b2, s3, b3 = params
    Cr = w1.shape[0]
    assert Cr == C, "reduction must be 1 for consistent channel counts"
    L = H * W
    itemsize = jnp.dtype(x.dtype).itemsize

    Bn = _choose_block_n(N, C, L, itemsize)
    BC = Bn * C
    grid_n = N // Bn

    # ---- host-side parameter prep (done once, outside the kernel) ----
    # Fold BN scales into conv weights, replicate them block-diagonally over
    # the Bn batch elements of a block, and tile the BN shifts.
    eye_b = jnp.eye(Bn, dtype=jnp.float32)
    W1b = jnp.kron(eye_b, w1 * s1)                 # (BC, BC)
    W2b = jnp.kron(eye_b, w2 * s2)                 # (BC, BC)
    W3Hb = jnp.kron(eye_b, w3h * s3)               # (BC, BC)
    W3Wb = jnp.kron(eye_b, w3w * s3)               # (BC, BC)
    b1t = jnp.tile(b1, (Bn, 1))                    # (BC, 1)
    b2t = jnp.tile(b2, (Bn, 1))
    b3t = jnp.tile(b3, (Bn, 1))

    # Constant pooling / expansion matrices (mean factors folded in).
    eye_h = jnp.eye(H, dtype=jnp.float32)
    eye_w = jnp.eye(W, dtype=jnp.float32)
    AH = jnp.kron(eye_h, jnp.ones((W, 1), jnp.float32)) / W   # (L, H) mean over W
    AW = jnp.kron(jnp.ones((H, 1), jnp.float32), eye_w) / H   # (L, W) mean over H
    EH = jnp.kron(eye_h, jnp.ones((1, W), jnp.float32))       # (H, L) expand over W
    EW = jnp.kron(jnp.ones((1, H), jnp.float32), eye_w)       # (W, L) expand over H

    # Lane-dense flattened view of x (contiguous reshape => free).
    x2 = x.reshape(N * C, L)

    def const_spec(a):
        shape = a.shape
        return pl.BlockSpec(shape, lambda n, _r=len(shape): (0,) * _r)

    out2 = pl.pallas_call(
        coord_attention_kernel,
        out_shape=jax.ShapeDtypeStruct((N * C, L), x.dtype),
        grid_spec=pltpu.PrefetchScalarGridSpec(
            num_scalar_prefetch=0,
            grid=(grid_n,),
            in_specs=[
                pl.BlockSpec((BC, L), lambda n: (n, 0)),     # x block (lane-dense)
                const_spec(W1b), const_spec(W2b),
                const_spec(W3Hb), const_spec(W3Wb),
                const_spec(AH), const_spec(AW),
                const_spec(EH), const_spec(EW),
                const_spec(b1t), const_spec(b2t), const_spec(b3t),
            ],
            out_specs=pl.BlockSpec((BC, L), lambda n: (n, 0)),
        ),
        compiler_params=pltpu.CompilerParams(
            dimension_semantics=("parallel",),
            vmem_limit_bytes=48 * 1024 * 1024,
        ),
    )(x2, W1b, W2b, W3Hb, W3Wb, AH, AW, EH, EW, b1t, b2t, b3t)

    return out2.reshape(N, C, H, W)


def init_params(key, dim, reduction=1):
    cr = dim // reduction
    ks = jax.random.split(key, 15)

    def bn_fold(kg, kb, km, kv, ch, eps=1e-5):
        gamma = 1.0 + 0.1 * jax.random.normal(kg, (ch,), jnp.float32)
        beta = 0.1 * jax.random.normal(kb, (ch,), jnp.float32)
        mean = 0.1 * jax.random.normal(km, (ch,), jnp.float32)
        var = 1.0 + 0.1 * jnp.abs(jax.random.normal(kv, (ch,), jnp.float32))
        scale = gamma / jnp.sqrt(var + eps)
        shift = beta - mean * scale
        return scale.reshape(ch, 1), shift.reshape(ch, 1)

    w1 = 0.2 * jax.random.normal(ks[0], (cr, dim), jnp.float32)      # Conv1d(dim, cr, 1)
    w2 = 0.2 * jax.random.normal(ks[1], (cr, dim), jnp.float32)      # Conv1d(dim, cr, 1)
    w3 = 0.2 * jax.random.normal(ks[2], (dim, 2 * cr), jnp.float32)  # Conv1d(2*cr, dim, 1)
    w3h, w3w = w3[:, :cr], w3[:, cr:]
    s1, b1 = bn_fold(ks[3], ks[4], ks[5], ks[6], cr)
    s2, b2 = bn_fold(ks[7], ks[8], ks[9], ks[10], cr)
    s3, b3 = bn_fold(ks[11], ks[12], ks[13], ks[14], dim)
    return (w1, w2, w3h, w3w, s1, b1, s2, b2, s3, b3)


def coord_attention_ref(x, params):
    """Pure-JAX reference of the same (intent) semantics."""
    w1, w2, w3h, w3w, s1, b1, s2, b2, s3, b3 = params
    h_desc = x.mean(axis=3)                                    # (N, C, H)
    w_desc = x.mean(axis=2)                                    # (N, C, W)
    a_h = jax.nn.sigmoid(jnp.einsum('oc,nch->noh', w1, h_desc) * s1[None] + b1[None])
    a_w = jax.nn.sigmoid(jnp.einsum('oc,ncw->now', w2, w_desc) * s2[None] + b2[None])
    x_att = x * a_h[:, :, :, None] * a_w[:, :, None, :]
    d_h = x_att.mean(axis=3)
    d_w = x_att.mean(axis=2)
    z = (jnp.einsum('oc,nch->noh', w3h, d_h)
         + jnp.einsum('oc,ncw->now', w3w, d_w))
    g = jax.nn.sigmoid(z * s3[None] + b3[None])
    return g[:, :, :, None] * x


if __name__ == "__main__":
    dim, reduction = 8, 1
    N, H, W = 2, 16, 16

    key = jax.random.PRNGKey(0)
    kx, kp = jax.random.split(key)
    x = jax.random.normal(kx, (N, dim, H, W), jnp.float32)
    params = init_params(kp, dim, reduction)

    out = coord_attention(x, params)
    out = jax.block_until_ready(out)

    ref = coord_attention_ref(x, params)
    assert out.shape == x.shape, (out.shape, x.shape)
    if not jnp.allclose(out, ref, rtol=1e-4, atol=1e-4):
        raise AssertionError("Pallas kernel does not match JAX reference")

    print("KERNEL_OK")
</pallas_src>

<mosaic_0001>
module attributes {stable_mosaic.version = 11 : i64} {
  func.func @coord_attention_kernel(%arg0: i32, %arg1: memref<8x256xf32, #tpu.memory_space<vmem>>, %arg2: memref<8x8xf32, #tpu.memory_space<vmem>>, %arg3: memref<8x8xf32, #tpu.memory_space<vmem>>, %arg4: memref<8x8xf32, #tpu.memory_space<vmem>>, %arg5: memref<8x8xf32, #tpu.memory_space<vmem>>, %arg6: memref<256x16xf32, #tpu.memory_space<vmem>>, %arg7: memref<256x16xf32, #tpu.memory_space<vmem>>, %arg8: memref<16x256xf32, #tpu.memory_space<vmem>>, %arg9: memref<16x256xf32, #tpu.memory_space<vmem>>, %arg10: memref<8x1xf32, #tpu.memory_space<vmem>>, %arg11: memref<8x1xf32, #tpu.memory_space<vmem>>, %arg12: memref<8x1xf32, #tpu.memory_space<vmem>>, %arg13: memref<8x256xf32, #tpu.memory_space<vmem>>) attributes {dimension_semantics = [#tpu.dimension_semantics<parallel>], iteration_bounds = array<i64: 2>, scalar_prefetch = 0 : i64, scratch_operands = 0 : i64, tpu.core_type = #tpu.core_type<tc>, window_params = [{transform_indices = @transform_0, window_bounds = array<i64: 8, 256>}, {pipeline_mode = #tpu.pipeline_mode<synchronous>, transform_indices = @transform_1, window_bounds = array<i64: 8, 8>}, {pipeline_mode = #tpu.pipeline_mode<synchronous>, transform_indices = @transform_2, window_bounds = array<i64: 8, 8>}, {pipeline_mode = #tpu.pipeline_mode<synchronous>, transform_indices = @transform_3, window_bounds = array<i64: 8, 8>}, {pipeline_mode = #tpu.pipeline_mode<synchronous>, transform_indices = @transform_4, window_bounds = array<i64: 8, 8>}, {pipeline_mode = #tpu.pipeline_mode<synchronous>, transform_indices = @transform_5, window_bounds = array<i64: 256, 16>}, {pipeline_mode = #tpu.pipeline_mode<synchronous>, transform_indices = @transform_6, window_bounds = array<i64: 256, 16>}, {pipeline_mode = #tpu.pipeline_mode<synchronous>, transform_indices = @transform_7, window_bounds = array<i64: 16, 256>}, {pipeline_mode = #tpu.pipeline_mode<synchronous>, transform_indices = @transform_8, window_bounds = array<i64: 16, 256>}, {pipeline_mode = #tpu.pipeline_mode<synchronous>, transform_indices = @transform_9, window_bounds = array<i64: 8, 1>}, {pipeline_mode = #tpu.pipeline_mode<synchronous>, transform_indices = @transform_10, window_bounds = array<i64: 8, 1>}, {pipeline_mode = #tpu.pipeline_mode<synchronous>, transform_indices = @transform_11, window_bounds = array<i64: 8, 1>}, {transform_indices = @transform_12, window_bounds = array<i64: 8, 256>}]} {
    %c0 = arith.constant 0 : index
    %c0_0 = arith.constant 0 : index
    %0 = vector.load %arg1[%c0, %c0_0] : memref<8x256xf32, #tpu.memory_space<vmem>>, vector<8x256xf32>
    %c0_1 = arith.constant 0 : index
    %c0_2 = arith.constant 0 : index
    %1 = vector.load %arg6[%c0_1, %c0_2] : memref<256x16xf32, #tpu.memory_space<vmem>>, vector<256x16xf32>
    %c0_3 = arith.constant 0 : index
    %c0_4 = arith.constant 0 : index
    %2 = vector.load %arg7[%c0_3, %c0_4] : memref<256x16xf32, #tpu.memory_space<vmem>>, vector<256x16xf32>
    %cst = arith.constant dense<0.000000e+00> : vector<8x16xf32>
    %3 = tpu.matmul %0, %1, %cst {dimension_numbers = #tpu.dot_dimension_numbers<[1], [0], [0], [1], [0, 0, 1, 1], [], []>} : vector<8x256xf32>, vector<256x16xf32>, vector<8x16xf32> -> vector<8x16xf32>
    %cst_5 = arith.constant dense<0.000000e+00> : vector<8x16xf32>
    %4 = tpu.matmul %0, %2, %cst_5 {dimension_numbers = #tpu.dot_dimension_numbers<[1], [0], [0], [1], [0, 0, 1, 1], [], []>} : vector<8x256xf32>, vector<256x16xf32>, vector<8x16xf32> -> vector<8x16xf32>
    %c0_6 = arith.constant 0 : index
    %c0_7 = arith.constant 0 : index
    %5 = vector.load %arg2[%c0_6, %c0_7] : memref<8x8xf32, #tpu.memory_space<vmem>>, vector<8x8xf32>
    %cst_8 = arith.constant dense<0.000000e+00> : vector<8x16xf32>
    %6 = tpu.matmul %5, %3, %cst_8 {dimension_numbers = #tpu.dot_dimension_numbers<[1], [0], [0], [1], [0, 0, 1, 1], [], []>} : vector<8x8xf32>, vector<8x16xf32>, vector<8x16xf32> -> vector<8x16xf32>
    %c0_9 = arith.constant 0 : index
    %c0_10 = arith.constant 0 : index
    %7 = vector.load %arg10[%c0_9, %c0_10] : memref<8x1xf32, #tpu.memory_space<vmem>>, vector<8x1xf32>
    %8 = vector.broadcast %7 : vector<8x1xf32> to vector<8x16xf32>
    %9 = arith.addf %6, %8 : vector<8x16xf32>
    %10 = arith.negf %9 : vector<8x16xf32>
    %11 = math.exp %10 : vector<8x16xf32>
    %cst_11 = arith.constant 1.000000e+00 : f32
    %12 = vector.broadcast %cst_11 : f32 to vector<8x16xf32>
    %13 = arith.addf %12, %11 : vector<8x16xf32>
    %14 = arith.divf %12, %13 : vector<8x16xf32>
    %c0_12 = arith.constant 0 : index
    %c0_13 = arith.constant 0 : index
    %15 = vector.load %arg3[%c0_12, %c0_13] : memref<8x8xf32, #tpu.memory_space<vmem>>, vector<8x8xf32>
    %cst_14 = arith.constant dense<0.000000e+00> : vector<8x16xf32>
    %16 = tpu.matmul %15, %4, %cst_14 {dimension_numbers = #tpu.dot_dimension_numbers<[1], [0], [0], [1], [0, 0, 1, 1], [], []>} : vector<8x8xf32>, vector<8x16xf32>, vector<8x16xf32> -> vector<8x16xf32>
    %c0_15 = arith.constant 0 : index
    %c0_16 = arith.constant 0 : index
    %17 = vector.load %arg11[%c0_15, %c0_16] : memref<8x1xf32, #tpu.memory_space<vmem>>, vector<8x1xf32>
    %18 = vector.broadcast %17 : vector<8x1xf32> to vector<8x16xf32>
    %19 = arith.addf %16, %18 : vector<8x16xf32>
    %20 = arith.negf %19 : vector<8x16xf32>
    %21 = math.exp %20 : vector<8x16xf32>
    %cst_17 = arith.constant 1.000000e+00 : f32
    %22 = vector.broadcast %cst_17 : f32 to vector<8x16xf32>
    %23 = arith.addf %22, %21 : vector<8x16xf32>
    %24 = arith.divf %22, %23 : vector<8x16xf32>
    %c0_18 = arith.constant 0 : index
    %c0_19 = arith.constant 0 : index
    %25 = vector.load %arg8[%c0_18, %c0_19] : memref<16x256xf32, #tpu.memory_space<vmem>>, vector<16x256xf32>
    %cst_20 = arith.constant dense<0.000000e+00> : vector<8x256xf32>
    %26 = tpu.matmul %14, %25, %cst_20 {dimension_numbers = #tpu.dot_dimension_numbers<[1], [0], [0], [1], [0, 0, 1, 1], [], []>} : vector<8x16xf32>, vector<16x256xf32>, vector<8x256xf32> -> vector<8x256xf32>
    %c0_21 = arith.constant 0 : index
    %c0_22 = arith.constant 0 : index
    %27 = vector.load %arg9[%c0_21, %c0_22] : memref<16x256xf32, #tpu.memory_space<vmem>>, vector<16x256xf32>
    %cst_23 = arith.constant dense<0.000000e+00> : vector<8x256xf32>
    %28 = tpu.matmul %24, %27, %cst_23 {dimension_numbers = #tpu.dot_dimension_numbers<[1], [0], [0], [1], [0, 0, 1, 1], [], []>} : vector<8x16xf32>, vector<16x256xf32>, vector<8x256xf32> -> vector<8x256xf32>
    %29 = arith.mulf %0, %28 : vector<8x256xf32>
    %cst_24 = arith.constant dense<0.000000e+00> : vector<8x16xf32>
    %30 = tpu.matmul %29, %1, %cst_24 {dimension_numbers = #tpu.dot_dimension_numbers<[1], [0], [0], [1], [0, 0, 1, 1], [], []>} : vector<8x256xf32>, vector<256x16xf32>, vector<8x16xf32> -> vector<8x16xf32>
    %31 = arith.mulf %30, %14 : vector<8x16xf32>
    %32 = arith.mulf %0, %26 : vector<8x256xf32>
    %cst_25 = arith.constant dense<0.000000e+00> : vector<8x16xf32>
    %33 = tpu.matmul %32, %2, %cst_25 {dimension_numbers = #tpu.dot_dimension_numbers<[1], [0], [0], [1], [0, 0, 1, 1], [], []>} : vector<8x256xf32>, vector<256x16xf32>, vector<8x16xf32> -> vector<8x16xf32>
    %34 = arith.mulf %33, %24 : vector<8x16xf32>
    %c0_26 = arith.constant 0 : index
    %c0_27 = arith.constant 0 : index
    %35 = vector.load %arg4[%c0_26, %c0_27] : memref<8x8xf32, #tpu.memory_space<vmem>>, vector<8x8xf32>
    %cst_28 = arith.constant dense<0.000000e+00> : vector<8x16xf32>
    %36 = tpu.matmul %35, %31, %cst_28 {dimension_numbers = #tpu.dot_dimension_numbers<[1], [0], [0], [1], [0, 0, 1, 1], [], []>} : vector<8x8xf32>, vector<8x16xf32>, vector<8x16xf32> -> vector<8x16xf32>
    %c0_29 = arith.constant 0 : index
    %c0_30 = arith.constant 0 : index
    %37 = vector.load %arg5[%c0_29, %c0_30] : memref<8x8xf32, #tpu.memory_space<vmem>>, vector<8x8xf32>
    %cst_31 = arith.constant dense<0.000000e+00> : vector<8x16xf32>
    %38 = tpu.matmul %37, %34, %cst_31 {dimension_numbers = #tpu.dot_dimension_numbers<[1], [0], [0], [1], [0, 0, 1, 1], [], []>} : vector<8x8xf32>, vector<8x16xf32>, vector<8x16xf32> -> vector<8x16xf32>
    %39 = arith.addf %36, %38 : vector<8x16xf32>
    %c0_32 = arith.constant 0 : index
    %c0_33 = arith.constant 0 : index
    %40 = vector.load %arg12[%c0_32, %c0_33] : memref<8x1xf32, #tpu.memory_space<vmem>>, vector<8x1xf32>
    %41 = vector.broadcast %40 : vector<8x1xf32> to vector<8x16xf32>
    %42 = arith.addf %39, %41 : vector<8x16xf32>
    %43 = arith.negf %42 : vector<8x16xf32>
    %44 = math.exp %43 : vector<8x16xf32>
    %cst_34 = arith.constant 1.000000e+00 : f32
    %45 = vector.broadcast %cst_34 : f32 to vector<8x16xf32>
    %46 = arith.addf %45, %44 : vector<8x16xf32>
    %47 = arith.divf %45, %46 : vector<8x16xf32>
    %c0_35 = arith.constant 0 : index
    %c0_36 = arith.constant 0 : index
    %48 = vector.load %arg8[%c0_35, %c0_36] : memref<16x256xf32, #tpu.memory_space<vmem>>, vector<16x256xf32>
    %cst_37 = arith.constant dense<0.000000e+00> : vector<8x256xf32>
    %49 = tpu.matmul %47, %48, %cst_37 {dimension_numbers = #tpu.dot_dimension_numbers<[1], [0], [0], [1], [0, 0, 1, 1], [], []>} : vector<8x16xf32>, vector<16x256xf32>, vector<8x256xf32> -> vector<8x256xf32>
    %50 = arith.mulf %49, %0 : vector<8x256xf32>
    %c0_38 = arith.constant 0 : index
    %c0_39 = arith.constant 0 : index
    %51 = vector.load %arg13[%c0_38, %c0_39] : memref<8x256xf32, #tpu.memory_space<vmem>>, vector<8x256xf32>
    tpu.vector_store %arg13[%c0_38, %c0_39], %50 {strides = array<i32>} : memref<8x256xf32, #tpu.memory_space<vmem>>, vector<8x256xf32>,
    return
  }
  func.func @transform_0(%arg0: i32) -> (i32, i32) {
    %c0_i32 = arith.constant 0 : i32
    %c0_i32_0 = arith.constant 0 : i32
    return %arg0, %c0_i32 : i32, i32
  }
  func.func @transform_1(%arg0: i32) -> (i32, i32) {
    %c0_i32 = arith.constant 0 : i32
    %c0_i32_0 = arith.constant 0 : i32
    %c0_i32_1 = arith.constant 0 : i32
    return %c0_i32, %c0_i32_0 : i32, i32
  }
  func.func @transform_2(%arg0: i32) -> (i32, i32) {
    %c0_i32 = arith.constant 0 : i32
    %c0_i32_0 = arith.constant 0 : i32
    %c0_i32_1 = arith.constant 0 : i32
    return %c0_i32, %c0_i32_0 : i32, i32
  }
  func.func @transform_3(%arg0: i32) -> (i32, i32) {
    %c0_i32 = arith.constant 0 : i32
    %c0_i32_0 = arith.constant 0 : i32
    %c0_i32_1 = arith.constant 0 : i32
    return %c0_i32, %c0_i32_0 : i32, i32
  }
  func.func @transform_4(%arg0: i32) -> (i32, i32) {
    %c0_i32 = arith.constant 0 : i32
    %c0_i32_0 = arith.constant 0 : i32
    %c0_i32_1 = arith.constant 0 : i32
    return %c0_i32, %c0_i32_0 : i32, i32
  }
  func.func @transform_5(%arg0: i32) -> (i32, i32) {
    %c0_i32 = arith.constant 0 : i32
    %c0_i32_0 = arith.constant 0 : i32
    %c0_i32_1 = arith.constant 0 : i32
    return %c0_i32, %c0_i32_0 : i32, i32
  }
  func.func @transform_6(%arg0: i32) -> (i32, i32) {
    %c0_i32 = arith.constant 0 : i32
    %c0_i32_0 = arith.constant 0 : i32
    %c0_i32_1 = arith.constant 0 : i32
    return %c0_i32, %c0_i32_0 : i32, i32
  }
  func.func @transform_7(%arg0: i32) -> (i32, i32) {
    %c0_i32 = arith.constant 0 : i32
    %c0_i32_0 = arith.constant 0 : i32
    %c0_i32_1 = arith.constant 0 : i32
    return %c0_i32, %c0_i32_0 : i32, i32
  }
  func.func @transform_8(%arg0: i32) -> (i32, i32) {
    %c0_i32 = arith.constant 0 : i32
    %c0_i32_0 = arith.constant 0 : i32
    %c0_i32_1 = arith.constant 0 : i32
    return %c0_i32, %c0_i32_0 : i32, i32
  }
  func.func @transform_9(%arg0: i32) -> (i32, i32) {
    %c0_i32 = arith.constant 0 : i32
    %c0_i32_0 = arith.constant 0 : i32
    %c0_i32_1 = arith.constant 0 : i32
    return %c0_i32, %c0_i32_0 : i32, i32
  }
  func.func @transform_10(%arg0: i32) -> (i32, i32) {
    %c0_i32 = arith.constant 0 : i32
    %c0_i32_0 = arith.constant 0 : i32
    %c0_i32_1 = arith.constant 0 : i32
    return %c0_i32, %c0_i32_0 : i32, i32
  }
  func.func @transform_11(%arg0: i32) -> (i32, i32) {
    %c0_i32 = arith.constant 0 : i32
    %c0_i32_0 = arith.constant 0 : i32
    %c0_i32_1 = arith.constant 0 : i32
    return %c0_i32, %c0_i32_0 : i32, i32
  }
  func.func @transform_12(%arg0: i32) -> (i32, i32) {
    %c0_i32 = arith.constant 0 : i32
    %c0_i32_0 = arith.constant 0 : i32
    return %arg0, %c0_i32 : i32, i32
  }
}

</mosaic_0001>

<bundles_post_ra>
// kernel: tpu_custom_call.1
= control target key start
LH: loop header
LB: loop body
LE: loop exit
PB: predicated region body
PF: predicated region fallthrough
CT: control target
= control target key end

     0   :  { %17 = vsyncpa [#allocation3], 0  ;;  %s2446_s0 = inlined_call_operand.vmem [shape: f32[16,256], index: 0, kind: input, shape index: {}]   ;;  %s2447_s1 = inlined_call_operand.vmem [shape: f32[8,8], index: 1, kind: input, shape index: {}]   ;;  %s2448_s2 = inlined_call_operand.vmem [shape: f32[8,8], index: 2, kind: input, shape index: {}]   ;;  %s2449_s3 = inlined_call_operand.vmem [shape: f32[8,8], index: 3, kind: input, shape index: {}]   ;;  %s2450_s4 = inlined_call_operand.vmem [shape: f32[8,8], index: 4, kind: input, shape index: {}]   ;;  %s2451_s5 = inlined_call_operand.vmem [shape: f32[256,16], index: 5, kind: input, shape index: {}]   ;;  %s2452_s6 = inlined_call_operand.vmem [shape: f32[256,16], index: 6, kind: input, shape index: {}]   ;;  %s2453_s7 = inlined_call_operand.vmem [shape: f32[16,256], index: 7, kind: input, shape index: {}]   ;;  %s2454_s8 = inlined_call_operand.vmem [shape: f32[16,256], index: 8, kind: input, shape index: {}]   ;;  %s2455_s9 = inlined_call_operand.vmem [shape: f32[8,1], index: 9, kind: input, shape index: {}]   ;;  %s2456_s10 = inlined_call_operand.vmem [shape: f32[8,1], index: 10, kind: input, shape index: {}]   ;;  %s2457_s11 = inlined_call_operand.vmem [shape: f32[8,1], index: 11, kind: input, shape index: {}]   ;;  %s2458_s12 = inlined_call_operand.hbm [shape: f32[16,256], index: 12, kind: output, shape index: {}]  }
   0x1   :  { %19 = vsyncpa [#allocation3 + $0x1], 0  ;;  %s1928_s21 = smov 0   ;;  %s1930_s22 = smov 0  }
   0x2   :  { %s1932_s23 = smov 0   ;;  %s1934_s24 = smov 0  }
   0x3 LB: > { %2462 = sst [smem:[#allocation5_spill]] %s1853_s23  ;;  %s1949_s25 = sadd.s32 4294967295, %s1857_s24   ;;  %s1857_s24 = sphi %s1934_s24, %s2467_s24   ;;  %s1853_s23 = sphi %s1932_s23, %s2469_s23   ;;  %s1849_s22 = sphi %s1930_s22, %s2471_s22   ;;  %s1845_s21 = sphi %s1928_s21, %s2470_s21  }
   0x4   : > { %s1407_s26 = sadd.s32 4294967294, %s1857_s24   ;;  %s1953_s27 = sadd.s32 1, %s1857_s24  }
   0x5   : > { %2463 = sst [smem:[#allocation6_spill]] %s1953_s27  ;;  %s289_s28 = sadd.s32 1, %s1853_s23 }
   0x6   : > { %s286_s29 = ssub.s32 %s1857_s24, %s1953_s27  ;;  %p299_p0 = scmp.ne.s32.totalorder %s1853_s23, %s1849_s22 }
   0x7   : > { %p287_p1 = scmp.eq.s32.totalorder %s286_s29, 0  ;;  %p300_p2 = scmp.eq.s32.totalorder %s1949_s25, 1 }
   0x8   : > { %p305_p3 = scmp.ne.s32.totalorder %s1849_s22, %s1845_s21  ;;  %p306_p4 = scmp.eq.s32.totalorder %s1407_s26, 1 }
   0x9   : > { %s1964_s30 = scalar_select %p287_p1, %s1853_s23, %s289_s28  }
   0xa   : > { %p1966_p5 = por %p300_p2, %p299_p0  ;;  %p1970_p6 = por %p306_p4, %p305_p3 }
   0xb   : > { %2464 = sst [smem:[#allocation7_spill]] %s1964_s30  ;;  %p1410_p7 = scmp.ge.s32.totalorder %s1857_s24, 1 }
   0xc   : > { %p365_p8 = scmp.lt.s32.totalorder %s1857_s24, 3 }
   0xe   : > { %p366_p9 = pnand %p1410_p7, %p365_p8 }
   0xf   : > { %v430_v0 = vld [vmem:[%s2451_s5 + $0x80] sm:$0xff] (!%p366_p9)  ;;  %v431_v1 = vld [vmem:[%s2451_s5 + $0x88] sm:$0xff] (!%p366_p9)  ;;  %v432_v11 = vld [vmem:[%s2451_s5 + $0x90] sm:$0xff] (!%p366_p9)  ;;  %p407_p10 = scmp.lt.s32.totalorder (!%p366_p9), %s1949_s25, 1  ;;  %vm1860_vm0 = vmmov (!%p366_p9), 0   ;;  %vm625_vm1 = vcmask (!%p366_p9), 64512  }
  0x10   : > { %369 = sbr.rel (%p366_p9) target bundleno = 1413 (0x585), region = 68  ;;  %v462_v2 = vld [vmem:[%s2452_s6 + $0x80] sm:$0xff] (!%p366_p9)  ;;  %v1985_v3 = vpack.c.bf16 (!%p366_p9), %v431_v1, %v430_v0  ;;  %v463_v4 = vld [vmem:[%s2452_s6 + $0x88] sm:$0xff] (!%p366_p9)  ;;  %v433_v13 = vld [vmem:[%s2451_s5 + $0x98] sm:$0xff] (!%p366_p9)  ;;  %vm795_vm2 = vcmask (!%p366_p9), 130048   ;;  %s1430_s16 = sshll.u32 (!%p366_p9), %s1949_s25, 8 }
  0x11   : > { %v414_v5 = vld [vmem:[%s2451_s5] sm:$0xff] (!%p366_p9)  ;;  %v415_v6 = vld [vmem:[%s2451_s5 + $0x8] sm:$0xff] (!%p366_p9)  ;;  %v1996_v7 = vpack.c.bf16 (!%p366_p9), %v463_v4, %v462_v2  ;;  %v464_v14 = vld [vmem:[%s2452_s6 + $0x90] sm:$0xff] (!%p366_p9)  ;;  %v2023_v16 = vpack.c.bf16 (!%p366_p9), %v433_v13, %v432_v11  ;;  %s1862_s20 = smov (!%p366_p9), [#allocation2]  }
  0x12   : > { %v1998_v8 = vpack.c.bf16 (!%p366_p9), %v415_v6, %v414_v5  ;;  %v446_v9 = vld [vmem:[%s2452_s6] sm:$0xff] (!%p366_p9)  ;;  %v447_v10 = vld [vmem:[%s2452_s6 + $0x8] sm:$0xff] (!%p366_p9)  ;;  %1600 = vmatprep.subr.bf16.mxu0 (!%p366_p9), %v1985_v3  ;;  %v465_v15 = vld [vmem:[%s2452_s6 + $0x98] sm:$0xff] (!%p366_p9)  ;;  %s1799_s26 = sshll.u32 (!%p366_p9), %s1862_s20, 4  ;;  %s1800_s26 = int_to_ptr.vmem [resolvable:$false] %s1799_s26 }
  0x13   : > { %v2010_v12 = vpack.c.bf16 (!%p366_p9), %v447_v10, %v446_v9  ;;  %1632 = vmatprep.subr.bf16.mxu1 (!%p366_p9), %v1996_v7  ;;  %v2025_v17 = vpack.c.bf16 (!%p366_p9), %v465_v15, %v464_v14  ;;  %v416_v18 = vld [vmem:[%s2451_s5 + $0x10] sm:$0xff] (!%p366_p9)  ;;  %v417_v19 = vld [vmem:[%s2451_s5 + $0x18] sm:$0xff] (!%p366_p9)  ;;  %v434_v23 = vld [vmem:[%s2451_s5 + $0xa0] sm:$0xff] (!%p366_p9)  ;;  %s1801_s28 = scalar_lea.vmem (!%p366_p9), %s1800_s26, 512 }
  0x14   : > { %1602 = vmatpush3.bf16.msra.mxu0 (!%p366_p9), %v1998_v8  ;;  %v448_v20 = vld [vmem:[%s2452_s6 + $0x10] sm:$0xff] (!%p366_p9)  ;;  %v2037_v21 = vpack.c.bf16 (!%p366_p9), %v417_v19, %v416_v18  ;;  %v449_v22 = vld [vmem:[%s2452_s6 + $0x18] sm:$0xff] (!%p366_p9)  ;;  %v435_v24 = vld [vmem:[%s2451_s5 + $0xa8] sm:$0xff] (!%p366_p9) }
  0x15   : > { %1634 = vmatpush3.bf16.msra.mxu1 (!%p366_p9), %v2010_v12  ;;  %1604 = vmatprep.subr.bf16.mxu0 (!%p366_p9), %v2023_v16  ;;  %v2050_v25 = vpack.c.bf16 (!%p366_p9), %v449_v22, %v448_v20  ;;  %v2052_v26 = vpack.c.bf16 (!%p366_p9), %v435_v24, %v434_v23  ;;  %v466_v27 = vld [vmem:[%s2452_s6 + $0xa0] sm:$0xff] (!%p366_p9)  ;;  %v467_v28 = vld [vmem:[%s2452_s6 + $0xa8] sm:$0xff] (!%p366_p9)  ;;  %v436_v35 = vld [vmem:[%s2451_s5 + $0xb0] sm:$0xff] (!%p366_p9) }
  0x16   : > { %1636 = vmatprep.subr.bf16.mxu1 (!%p366_p9), %v2025_v17  ;;  %v418_v29 = vld [vmem:[%s2451_s5 + $0x20] sm:$0xff] (!%p366_p9)  ;;  %v2063_v30 = vpack.c.bf16 (!%p366_p9), %v467_v28, %v466_v27  ;;  %v419_v31 = vld [vmem:[%s2451_s5 + $0x28] sm:$0xff] (!%p366_p9)  ;;  %v437_v36 = vld [vmem:[%s2451_s5 + $0xb8] sm:$0xff] (!%p366_p9) }
  0x17   : > { %v450_v32 = vld [vmem:[%s2452_s6 + $0x20] sm:$0xff]  ;;  %v451_v33 = vld [vmem:[%s2452_s6 + $0x28] sm:$0xff]  ;;  %v2076_v34 = vpack.c.bf16 %v419_v31, %v418_v29  ;;  %v468_v37 = vld [vmem:[%s2452_s6 + $0xb0] sm:$0xff]  ;;  %v2091_v39 = vpack.c.bf16 %v437_v36, %v436_v35  ;;  %s2126_s15 = scalar_select %p407_p10, %s1949_s25, 1 }
  0x18   : > { %1606 = vmatpush3.bf16.msra.mxu0 %v2037_v21  ;;  %v2089_v38 = vpack.c.bf16 %v451_v33, %v450_v32  ;;  %v469_v40 = vld [vmem:[%s2452_s6 + $0xb8] sm:$0xff]  ;;  %v420_v41 = vld [vmem:[%s2451_s5 + $0x30] sm:$0xff]  ;;  %v438_v46 = vld [vmem:[%s2451_s5 + $0xc0] sm:$0xff] }
  0x19   : > { %1638 = vmatpush3.bf16.msra.mxu1 %v2050_v25  ;;  %1608 = vmatprep.subr.bf16.mxu0 %v2052_v26  ;;  %v421_v42 = vld [vmem:[%s2451_s5 + $0x38] sm:$0xff]  ;;  %v2103_v43 = vpack.c.bf16 %v469_v40, %v468_v37  ;;  %v452_v44 = vld [vmem:[%s2452_s6 + $0x30] sm:$0xff]  ;;  %v439_v47 = vld [vmem:[%s2451_s5 + $0xc8] sm:$0xff]  ;;  %s1429_s19 = sshll.u32 %s2126_s15, 4  ;;  %s404_s15 = sand.u32 1, %s1849_s22  }
  0x1a   : > { %1640 = vmatprep.subr.bf16.mxu1 %v2063_v30  ;;  %v453_v45 = vld [vmem:[%s2452_s6 + $0x38] sm:$0xff]  ;;  %v470_v48 = vld [vmem:[%s2452_s6 + $0xc0] sm:$0xff]  ;;  %v471_v49 = vld [vmem:[%s2452_s6 + $0xc8] sm:$0xff]  ;;  %v2129_v50 = vpack.c.bf16 %v421_v42, %v420_v41  ;;  %v2135_v52 = vpack.c.bf16 %v439_v47, %v438_v46  ;;  %s2198_s30 = scalar_lea.vmem %s2446_s0, %s1429_s19  ;;  %s1411_s29 = sshll.u32 %s404_s15, 4 }
  0x1b   : > { %v2133_v51 = vpack.c.bf16 %v453_v45, %v452_v44  ;;  %v422_v53 = vld [vmem:[%s2451_s5 + $0x40] sm:$0xff]  ;;  %v423_v54 = vld [vmem:[%s2451_s5 + $0x48] sm:$0xff]  ;;  %v2147_v56 = vpack.c.bf16 %v471_v49, %v470_v48  ;;  %v440_v58 = vld [vmem:[%s2451_s5 + $0xd0] sm:$0xff]  ;;  %v1859_v48 = vmov 0.0   ;;  %s406_s17 = scalar_lea.vmem [#allocation2], %s1411_s29  ;;  %s2404_s19 = scalar_lea.hbm %s2458_s12, %s1430_s16 }
  0x1c   : > { %1610 = vmatpush3.bf16.msra.mxu0 %v2076_v34  ;;  %v454_v55 = vld [vmem:[%s2452_s6 + $0x40] sm:$0xff]  ;;  %v455_v57 = vld [vmem:[%s2452_s6 + $0x48] sm:$0xff]  ;;  %v441_v59 = vld [vmem:[%s2451_s5 + $0xd8] sm:$0xff]  ;;  %v2166_v62 = vpack.c.bf16 %v423_v54, %v422_v53  ;;  %v1861_v53 = vmov 0   ;;  %s1348_s23 = sshll.u32 %s406_s17, 4  ;;  %s1334_s25 = scalar_lea.sflag [#allocation3], %s404_s15  ;;  %s2406_s23 = int_to_ptr.vmem [resolvable:$true] %s1348_s23 }
  0x1d   : > { %1642 = vmatpush3.bf16.msra.mxu1 %v2089_v38  ;;  %1612 = vmatprep.subr.bf16.mxu0 %v2091_v39  ;;  %v472_v60 = vld [vmem:[%s2452_s6 + $0xd0] sm:$0xff]  ;;  %v473_v61 = vld [vmem:[%s2452_s6 + $0xd8] sm:$0xff]  ;;  %v2170_v63 = vpack.c.bf16 %v455_v57, %v454_v55  ;;  %v2172_v0 = vpack.c.bf16 %v441_v59, %v440_v58  ;;  %v442_v9 = vld [vmem:[%s2451_s5 + $0xe0] sm:$0xff]  ;;  %s1795_s18 = scalar_lea.vmem %s2406_s23, 256  ;;  %p1802_p0 = scmp.lt.s32.totalorder %s2406_s23, %s1800_s26 }
  0x1e   : > { %1644 = vmatprep.subr.bf16.mxu1 %v2103_v43  ;;  %v424_v1 = vld [vmem:[%s2451_s5 + $0x50] sm:$0xff]  ;;  %v425_v2 = vld [vmem:[%s2451_s5 + $0x58] sm:$0xff]  ;;  %v2184_v5 = vpack.c.bf16 %v473_v61, %v472_v60  ;;  %v443_v10 = vld [vmem:[%s2451_s5 + $0xe8] sm:$0xff]  ;;  %1781 = vset.pattern.permute.xlu0 %v1861_v53  ;;  %p1796_p11 = scmp.ne.s32.totalorder %s2406_s23, %s1795_s18  ;;  %p1803_p1 = scmp.lt.s32.totalorder %s1801_s28, %s1795_s18 }
  0x1f   : > { %v456_v4 = vld [vmem:[%s2452_s6 + $0x50] sm:$0xff]  ;;  %v457_v6 = vld [vmem:[%s2452_s6 + $0x58] sm:$0xff]  ;;  %v474_v11 = vld [vmem:[%s2452_s6 + $0xe0] sm:$0xff]  ;;  %v2207_v14 = vpack.c.bf16 %v425_v2, %v424_v1  ;;  %v2216_v19 = vpack.c.bf16 %v443_v10, %v442_v9  ;;  %1782 = vset.pattern.permute.xlu1 %v1861_v53 }
  0x20   : > { %1614 = vmatpush3.bf16.msra.mxu0 %v2129_v50  ;;  %v475_v13 = vld [vmem:[%s2452_s6 + $0xe8] sm:$0xff]  ;;  %v426_v15 = vld [vmem:[%s2451_s5 + $0x60] sm:$0xff]  ;;  %v2214_v18 = vpack.c.bf16 %v457_v6, %v456_v4  ;;  %v444_v28 = vld [vmem:[%s2451_s5 + $0xf0] sm:$0xff]  ;;  %p1797_p12 = pnand %p1796_p11, %p1966_p5  ;;  %p1804_p2 = por %p1803_p1, %p1802_p0 }
  0x21   : > { %1646 = vmatpush3.bf16.msra.mxu1 %v2133_v51  ;;  %1616 = vmatprep.subr.bf16.mxu0 %v2135_v52  ;;  %v427_v20 = vld [vmem:[%s2451_s5 + $0x68] sm:$0xff]  ;;  %v458_v22 = vld [vmem:[%s2452_s6 + $0x60] sm:$0xff]  ;;  %v2228_v24 = vpack.c.bf16 %v475_v13, %v474_v11  ;;  %v445_v29 = vld [vmem:[%s2451_s5 + $0xf8] sm:$0xff] }
  0x22   : > { %1648 = vmatprep.subr.bf16.mxu1 %v2147_v56  ;;  %v2225_v23 = vld [vmem:[%s2198_s30 + $0x8] sm:$0xff]  ;;  %v476_v31 = vld [vmem:[%s2452_s6 + $0xf0] sm:$0xff]  ;;  %v477_v32 = vld [vmem:[%s2452_s6 + $0xf8] sm:$0xff]  ;;  %v2248_v33 = vpack.c.bf16 %v427_v20, %v426_v15  ;;  %v2254_v36 = vpack.c.bf16 %v445_v29, %v444_v28  ;;  %p1798_p13 = pneg %p1797_p12 }
  0x23   : > { %v459_v27 = vld [vmem:[%s2452_s6 + $0x68] sm:$0xff]  ;;  %542 = vmatprep.mubr.f32.mxu0 %v2225_v23  ;;  %612 = vmatprep.mubr.f32.mxu1 %v2225_v23  ;;  %v428_v37 = vld [vmem:[%s2451_s5 + $0x70] sm:$0xff]  ;;  %v429_v40 = vld [vmem:[%s2451_s5 + $0x78] sm:$0xff]  ;;  %v2263_v41 = vpack.c.bf16 %v477_v32, %v476_v31 }
  0x24   : > { %1618 = vmatpush3.bf16.msra.mxu0 %v2166_v62  ;;  %v2252_v35 = vpack.c.bf16 %v459_v27, %v458_v22  ;;  %v460_v42 = vld [vmem:[%s2452_s6 + $0x70] sm:$0xff]  ;;  %v461_v44 = vld [vmem:[%s2452_s6 + $0x78] sm:$0xff]  ;;  %v2272_v45 = vpack.c.bf16 %v429_v40, %v428_v37  ;;  %v2281_v47 = vld [vmem:[%s2198_s30] sm:$0xff]  ;;  %p1805_p3 = pnand %p1804_p2, %p1798_p13 }
  0x25   : > { %1650 = vmatpush3.bf16.msra.mxu1 %v2170_v63  ;;  %1620 = vmatprep.subr.bf16.mxu0 %v2172_v0  ;;  %v2276_v46 = vpack.c.bf16 %v461_v44, %v460_v42  ;;  %v619_v49 = vld [vmem:[%s2455_s9] sm:$0xff]  ;;  %v792_v4 = vld [vmem:[%s2453_s7 + $0x8] sm:$0xff]  ;;  %v794_v6 = vld [vmem:[%s2453_s7 + $0x18] sm:$0xff] }
  0x26   : > { %1652 = vmatprep.subr.bf16.mxu1 %v2184_v5  ;;  %622 = vperm.xlu0 %1781, %v619_v49   ;;  %v706_v54 = vld [vmem:[%s2456_s10] sm:$0xff]  ;;  %v871_v9 = vld [vmem:[%s2454_s8 + $0x8] sm:$0xff]  ;;  %v2317_v10 = vpack.c.bf16 %v794_v6, %v792_v4  ;;  %v873_v11 = vld [vmem:[%s2454_s8 + $0x18] sm:$0xff] }
  0x27   : > { %v618_v61 = vld [vmem:[%s2447_s1] sm:$0xff]  ;;  %v793_v15 = vld [vmem:[%s2453_s7 + $0x10] sm:$0xff]  ;;  %v1667_v20 = vpack.c.bf16 %v873_v11, %v871_v9 }
  0x28   : > { %1622 = vmatpush3.bf16.msra.mxu0 %v2207_v14  ;;  %v705_v2 = vld [vmem:[%s2448_s2] sm:$0xff]  ;;  %v872_v28 = vld [vmem:[%s2454_s8 + $0x10] sm:$0xff] }
  0x29   : > { %1654 = vmatpush3.bf16.msra.mxu1 %v2214_v18  ;;  %1624 = vmatprep.subr.bf16.mxu0 %v2216_v19  ;;  %v791_v13 = vld [vmem:[%s2453_s7] sm:$0xff] }
  0x2a   : > { %1656 = vmatprep.subr.bf16.mxu1 %v2228_v24  ;;  %709 = vperm.xlu0 %1781, %v706_v54   ;;  %v2328_v22 = vpack.c.bf16 %v793_v15, %v791_v13  ;;  %v870_v27 = vld [vmem:[%s2454_s8] sm:$0xff] }
  0x2b   : > { %v1669_v29 = vpack.c.bf16 %v872_v28, %v870_v27 }
  0x2c   : > { %1626 = vmatpush3.bf16.msra.mxu0 %v2248_v33 }
  0x2d   : > { %1658 = vmatpush3.bf16.msra.mxu1 %v2252_v35  ;;  %1628 = vmatprep.subr.bf16.mxu0 %v2254_v36 }
  0x2e   : > { %1660 = vmatprep.subr.bf16.mxu1 %v2263_v41 }
  0x30   : > { %1630 = vmatpush3.bf16.msra.mxu0 %v2272_v45 }
  0x31   : > { %1662 = vmatpush3.bf16.msra.mxu1 %v2276_v46  ;;  %1579 = vmatprep.subr.mxu0 %v1859_v48 }
  0x32   : > { %1584 = vmatprep.subr.mxu1 %v1859_v48 }
  0x33   : > { %543 = vmatmul.mubr.f32.vlgmr.msra.gmra.mrb[0].mxu0 %v2281_v47 }
  0x34   : > { %613 = vmatmul.mubr.f32.vlgmr.msra.gmra.mrb[0].mxu1 %v2281_v47  ;;  %1581 = vmatprep.mubr.msk.f32.mxu0 %vm1860_vm0, %v1859_v48 }
  0x35   : > { %1586 = vmatprep.mubr.msk.f32.mxu1 %vm1860_vm0, %v1859_v48 }
  0xa5   : > { %v623_v31 = vpop.permute.xlu0 %622 }
  0xa9   : > { %v710_v32 = vpop.permute.xlu0 %709 }
 0x106   : > { %v1463_v55 = vpop.f32.mrb[0].mxu0 }
 0x107   : > { %v1498_v57 = vpop.f32.mrb[0].mxu1  ;;  %v1464_v58 = vpop.f32.mrb[1].mxu0 }
 0x108   : > { %v1465_v59 = vadd.f32 %v1464_v58, %v1463_v55  ;;  %v1499_v60 = vpop.f32.mrb[1].mxu1 }
 0x109   : > { %v1500_v1 = vadd.f32 %v1499_v60, %v1498_v57 }
 0x10a   : > { %1580 = vmatpush3.msra.mxu0 %v1465_v59 }
 0x10b   : > { %1585 = vmatpush3.msra.mxu1 %v1500_v1  ;;  %1582 = vmatmul.mubr.msk.f32.vlgmr.msra.gmra.mrb[2].mxu0 %vm625_vm1, %v618_v61 }
 0x10c   : > { %1587 = vmatmul.mubr.msk.f32.vlgmr.msra.gmra.mrb[2].mxu1 %vm625_vm1, %v705_v2  ;;  %863 = vmatprep.mubr.f32.mxu0 %v1859_v48 }
 0x10d   : > { %941 = vmatprep.mubr.f32.mxu1 %v1859_v48  ;;  %1664 = vmatprep.subr.bf16.mxu0 %v2317_v10 }
 0x10e   : > { %1668 = vmatprep.subr.bf16.mxu1 %v1667_v20  ;;  %1666 = vmatpush1.bf16.msra.mxu0 %v2328_v22 }
 0x10f   : > { %1670 = vmatpush1.bf16.msra.mxu1 %v1669_v29  ;;  %1672 = vmatprep.subr.bf16.mxu0 %v1985_v3 }
 0x110   : > { %1704 = vmatprep.subr.bf16.mxu1 %v1996_v7 }
 0x1de   : > { %v695_v37 = vpop.f32.mrb[2].mxu0 }
 0x1df   : > { %v696_v40 = vadd.f32 %v695_v37, %v623_v31  ;;  %v781_v42 = vpop.f32.mrb[2].mxu1  ;;  %v1583_v44 = vpop.f32.mrb[3].mxu0 }
 0x1e0   : > { %v782_v49 = vadd.f32 %v781_v42, %v710_v32  ;;  %v1588_v53 = vpop.f32.mrb[3].mxu1 }
 0x1e1   : > { %v1415_v54 = vmul.f32 -1.442695, %v696_v40 }
 0x1e2   : > { %v1417_v55 = vmul.f32 -1.442695, %v782_v49 }
 0x1e3   : > { %1783 = vpow2.f32 %v1415_v54 }
 0x1e4   : > { %1785 = vpow2.f32 %v1417_v55 }
 0x1ed   : > { %v1784_v57 = vpop.eup %1783 }
 0x1ee   : > { %v1786_v58 = vpop.eup %1785  ;;  %v702_v59 = vadd.f32 1.0, %v1784_v57 }
 0x1ef   : > { %v788_v60 = vadd.f32 1.0, %v1786_v58 }
 0x1f0   : > { %1787 = vrcp.f32 %v702_v59 }
 0x1f1   : > { %1789 = vrcp.f32 %v788_v60 }
 0x1fa   : > { %v1788_v3 = vpop.eup %1787 }
 0x1fb   : > { %v1790_v7 = vpop.eup %1789  ;;  %1418 = vmatmul.mubr.msk.f32.vlgmr.msra.gmra.mrb[4].mxu0 %vm795_vm2, %v1788_v3 }
 0x1fc   : > { %1419 = vmatmul.mubr.msk.f32.vlgmr.msra.gmra.mrb[4].mxu1 %vm795_vm2, %v1790_v7  ;;  %1674 = vmatpush3.bf16.msra.mxu0 %v1998_v8 }
 0x1fd   : > { %1706 = vmatpush3.bf16.msra.mxu1 %v2010_v12  ;;  %1676 = vmatprep.subr.bf16.mxu0 %v2023_v16 }
 0x1fe   : > { %1708 = vmatprep.subr.bf16.mxu1 %v2025_v17 }
 0x200   : > { %1678 = vmatpush3.bf16.msra.mxu0 %v2037_v21 }
 0x201   : > { %1710 = vmatpush3.bf16.msra.mxu1 %v2050_v25  ;;  %1680 = vmatprep.subr.bf16.mxu0 %v2052_v26 }
 0x202   : > { %1712 = vmatprep.subr.bf16.mxu1 %v2063_v30 }
 0x204   : > { %1682 = vmatpush3.bf16.msra.mxu0 %v2076_v34  ;;  %v1242_v34 = vld [vmem:[%s2457_s11] sm:$0xff] }
 0x205   : > { %1714 = vmatpush3.bf16.msra.mxu1 %v2089_v38  ;;  %1684 = vmatprep.subr.bf16.mxu0 %v2091_v39 }
 0x206   : > { %1716 = vmatprep.subr.bf16.mxu1 %v2103_v43  ;;  %1245 = vperm.xlu1 %1782, %v1242_v34  }
 0x208   : > { %1686 = vmatpush3.bf16.msra.mxu0 %v2129_v50 }
 0x209   : > { %1718 = vmatpush3.bf16.msra.mxu1 %v2133_v51  ;;  %1688 = vmatprep.subr.bf16.mxu0 %v2135_v52 }
 0x20a   : > { %1720 = vmatprep.subr.bf16.mxu1 %v2147_v56 }
 0x20c   : > { %1690 = vmatpush3.bf16.msra.mxu0 %v2166_v62  ;;  %v1095_v62 = vld [vmem:[%s2450_s4] sm:$0xff] }
 0x20d   : > { %1722 = vmatpush3.bf16.msra.mxu1 %v2170_v63  ;;  %1692 = vmatprep.subr.bf16.mxu0 %v2172_v0  ;;  %v1094_v0 = vld [vmem:[%s2449_s3] sm:$0xff] }
 0x20e   : > { %1724 = vmatprep.subr.bf16.mxu1 %v2184_v5 }
 0x210   : > { %1694 = vmatpush3.bf16.msra.mxu0 %v2207_v14 }
 0x211   : > { %1726 = vmatpush3.bf16.msra.mxu1 %v2214_v18  ;;  %1696 = vmatprep.subr.bf16.mxu0 %v2216_v19 }
 0x212   : > { %1728 = vmatprep.subr.bf16.mxu1 %v2228_v24 }
 0x214   : > { %1698 = vmatpush3.bf16.msra.mxu0 %v2248_v33 }
 0x215   : > { %1730 = vmatpush3.bf16.msra.mxu1 %v2252_v35  ;;  %1700 = vmatprep.subr.bf16.mxu0 %v2254_v36 }
 0x216   : > { %1732 = vmatprep.subr.bf16.mxu1 %v2263_v41 }
 0x218   : > { %1702 = vmatpush3.bf16.msra.mxu0 %v2272_v45 }
 0x219   : > { %1734 = vmatpush3.bf16.msra.mxu1 %v2276_v46  ;;  %1589 = vmatprep.subr.mxu0 %v1859_v48 }
 0x21a   : > { %1594 = vmatprep.subr.mxu1 %v1859_v48 }
 0x285   : > { %v1246_v14 = vpop.permute.xlu1 %1245 }
 0x2ce   : > { %v865_v8 = vpop.f32.mrb[4].mxu0 }
 0x2cf   : > { %v943_v12 = vpop.f32.mrb[4].mxu1  ;;  %v867_v16 = vpop.f32.mrb[5].mxu0  ;;  %v1021_v25 = vmul.f32 %v865_v8, %v2281_v47 }
 0x2d0   : > { %v1022_v17 = vmul.f32 %v867_v16, %v2225_v23  ;;  %v945_v21 = vpop.f32.mrb[5].mxu1  ;;  %v948_v30 = vmul.f32 %v943_v12, %v2281_v47 }
 0x2d1   : > { %v949_v26 = vmul.f32 %v945_v21, %v2225_v23 }
 0x2d2   : > { %1087 = vmatprep.mubr.f32.mxu1 %v1022_v17 }
 0x2d3   : > { %1014 = vmatprep.mubr.f32.mxu0 %v949_v26  ;;  %1088 = vmatmul.mubr.f32.vlgmr.msra.gmra.mrb[6].mxu1 %v1021_v25 }
 0x2d4   : > { %1015 = vmatmul.mubr.f32.vlgmr.msra.gmra.mrb[6].mxu0 %v948_v30  ;;  %1596 = vmatprep.mubr.msk.f32.mxu1 %vm1860_vm0, %v1859_v48 }
 0x2d5   : > { %1591 = vmatprep.mubr.msk.f32.mxu0 %vm1860_vm0, %v1859_v48 }
 0x3a6   : > { %v1572_v38 = vpop.f32.mrb[6].mxu1 }
 0x3a7   : > { %v1537_v39 = vpop.f32.mrb[6].mxu0  ;;  %v1573_v43 = vpop.f32.mrb[7].mxu1 }
 0x3a8   : > { %v1538_v50 = vpop.f32.mrb[7].mxu0  ;;  %v1574_v51 = vadd.f32 %v1573_v43, %v1572_v38 }
 0x3a9   : > { %v1539_v52 = vadd.f32 %v1538_v50, %v1537_v39 }
 0x3aa   : > { %v1093_v56 = vmul.f32 %v1790_v7, %v1574_v51 }
 0x3ab   : > { %v1020_v63 = vmul.f32 %v1788_v3, %v1539_v52 }
 0x3ac   : > { %1590 = vmatpush3.msra.mxu0 %v1093_v56 }
 0x3ad   : > { %1595 = vmatpush3.msra.mxu1 %v1020_v63  ;;  %1592 = vmatmul.mubr.msk.f32.vlgmr.msra.gmra.mrb[8].mxu0 %vm625_vm1, %v1095_v62 }
 0x3ae   : > { %1597 = vmatmul.mubr.msk.f32.vlgmr.msra.gmra.mrb[8].mxu1 %vm625_vm1, %v1094_v0  ;;  %1736 = vmatprep.subr.bf16.mxu0 %v2317_v10 }
 0x3af   : > { %1738 = vmatpush1.bf16.msra.mxu0 %v2328_v22  ;;  %1322 = vmatprep.mubr.f32.mxu0 %v1859_v48 }
 0x480   : > { %v1165_v5 = vpop.f32.mrb[8].mxu0 }
 0x481   : > { %v1238_v18 = vpop.f32.mrb[8].mxu1  ;;  %v1593_v19 = vpop.f32.mrb[9].mxu0 }
 0x482   : > { %v1239_v24 = vadd.f32 %v1238_v18, %v1165_v5  ;;  %v1598_v33 = vpop.f32.mrb[9].mxu1 }
 0x484   : > { %v1248_v35 = vadd.f32 %v1246_v14, %v1239_v24 }
 0x486   : > { %v1422_v36 = vmul.f32 -1.442695, %v1248_v35 }
 0x488   : > { %1791 = vpow2.f32 %v1422_v36 }
 0x492   : > { %v1792_v41 = vpop.eup %1791 }
 0x493   : > { %v1252_v45 = vadd.f32 1.0, %v1792_v41 }
 0x495   : > { %1793 = vrcp.f32 %v1252_v45 }
 0x49f   : > { %v1794_v46 = vpop.eup %1793 }
 0x4a0   : > { %1423 = vmatmul.mubr.msk.f32.vlgmr.msra.gmra.mrb[10].mxu0 %vm795_vm2, %v1794_v46 }
 0x573   : > { %v1324_v48 = vpop.f32.mrb[10].mxu0 }
 0x574   : > { %v1329_v61 = vmul.f32 %v1324_v48, %v2281_v47  ;;  %v1326_v1 = vpop.f32.mrb[11].mxu0 }
 0x575   : > { %v1330_v2 = vmul.f32 %v1326_v1, %v2225_v23 }
 0x576   : > { %1331 = vst [vmem:[%s406_s17] sm:$0xff] %v1329_v61 }
 0x577   : > { %1332 = vst [vmem:[%s406_s17 + $0x8] sm:$0xff] %v1330_v2 }
 0x578   : > { %1808 = shalt.err (!%p1805_p3)
}
 0x579   : > { %s1809_s15 = scalar_lea.hbm %s2404_s19, 256  ;;  %s1813_s17 = scalar_lea.hbm %s2458_s12, 512 }
 0x57a   : > { %p1810_p4 = scmp.ne.s32.totalorder %s2404_s19, %s1809_s15  ;;  %p1814_p9 = scmp.lt.u32.totalorder %s2404_s19, %s2458_s12 }
 0x57b   : > { %p1815_p10 = scmp.lt.u32.totalorder %s1813_s17, %s1809_s15  ;;  %p1817_p12 = scmp.lt.u32.totalorder %s1809_s15, %s2404_s19 }
 0x57c   : > { %p1811_p7 = pnand %p1810_p4, %p1966_p5 }
 0x57d   : > { %p1816_p11 = por %p1815_p10, %p1814_p9 }
 0x57e   : > { %p1812_p8 = pneg %p1811_p7 }
 0x57f   : > { %p1818_p13 = por %p1817_p12, %p1816_p11 }
 0x581   : > { %p1819_p0 = pnand %p1818_p13, %p1812_p8 }
 0x583   : > { %1822 = shalt.err (!%p1819_p0)
}
 0x584   : > { %1739 = dma.vmem_to_hbm [thread:$0]  (%p1966_p5), %s2406_s23, 256, %s2404_s19, %s1334_s25  }
 0x585 PF: > { %p1745_p1 = scmp.ge.s32.totalorder %s1857_s24, 2  ;;  %s1360_s18 = sand.u32 1, %s1845_s21  }
 0x586   : > { %s1361_s20 = scalar_lea.sflag [#allocation3], %s1360_s18 }
 0x587   : > { %p1742_p2 = pnand %p1745_p1, %p1970_p6 }
 0x589   : > { %1840 = dma.done.wait (!%p1742_p2), %s1361_s20, 256  }
 0x58a   : > { %1842 = vsyncadd (!%p1742_p2), %s1361_s20, 4294967040  ;;  %s2467_s24 = sld [smem:[#allocation6_spill]]  ;;  %s2468_s26 = sld [smem:[#allocation5_spill]] }
 0x58b   : > { %s2469_s23 = sld [smem:[#allocation7_spill]]  ;;  %s2470_s21 = smov %s1849_s22 }
 0x590   : > { %p22_p3 = scmp.ge.s32.totalorder %s2467_s24, 4   ;;  %s2471_s22 = smov %s2468_s26 }
 0x592   :  { %24 = sbr.rel (!%p22_p3) target bundleno = 3 (0x3), region = 103 }
 0x599   :  { %1366 = vsyncpa [#allocation3], 1 }
 0x59a   :  { %1368 = vsyncpa [#allocation3 + $0x1], 1 }

</bundles_post_ra>
